<compile_context>
chip_gen: v6e
topology: v6e:2x2x1
jax: 0.10.0
libtpu: 0.0.40
codegen_flags: <defaults>
</compile_context>

<pallas_src>
import math
from functools import partial

import jax
import jax.numpy as jnp
from jax import lax
from jax.experimental import pallas as pl
from jax.experimental.pallas import tpu as pltpu


def _vgae_kernel(x_ref, adj_ref, w1_ref, w23_ref, noise_ref, out_ref, *, mm_dtype):
    """Whole-batch VGAE forward on a block-diagonal adjacency.

    Shapes (BN = B*N):
      x_ref     (BN, D)      node features, batch flattened into GEMM rows
      adj_ref   (BN, BN)     block-diagonal adjacency
      w1_ref    (D, H1)
      w23_ref   (H1, 2*H2)   [W_mean | W_logstd] fused
      noise_ref (BN, H2)     gaussian noise, pre-tiled to match the torch broadcast
      out_ref   (N, B*N)     lane-dense decode: out[i, b*N + j] == A_pred[b, i, j]
    """
    H2 = noise_ref.shape[1]
    N = out_ref.shape[0]
    B = out_ref.shape[1] // N

    def mm(a, b):
        # MXU GEMM; operands optionally cast to bf16, always accumulate in f32.
        return jnp.dot(a.astype(mm_dtype), b.astype(mm_dtype),
                       preferred_element_type=jnp.float32)

    adj = adj_ref[...]

    # GCN layer 1: relu(adj_bd @ (X @ W1)) -- plain 2D GEMMs, no per-batch loop.
    support1 = mm(x_ref[...], w1_ref[...])            # (BN, H1)
    hidden = jnp.maximum(mm(adj, support1), 0.0)       # (BN, H1)

    # mean / logstd GCN layers (identity activation), fused into one weight GEMM:
    #   adj_bd @ (hidden @ [W2 | W3]) = [adj_bd @ hidden @ W2 | adj_bd @ hidden @ W3]
    ms = mm(adj, mm(hidden, w23_ref[...]))              # (BN, 2*H2)
    mean = ms[:, :H2]
    logstd = ms[:, H2:]

    # Reparameterization in f32.
    # TODO(synk): exp(logstd) is unclamped, faithful to the torch module (can overflow
    # for pathological inputs).
    z = noise_ref[...] * jnp.exp(logstd) + mean         # (BN, H2), f32

    # Dot-product decode: one (BN, BN) gram GEMM contracting the feature dim directly
    # (no transpose materialized). The off-diagonal (cross-graph) blocks are free on
    # the MXU at this size and are simply never read back.
    zc = z.astype(mm_dtype)
    logits = lax.dot_general(zc, zc,
                             dimension_numbers=(((1,), (1,)), ((), ())),
                             preferred_element_type=jnp.float32)   # (BN, BN)

    # Extract the B diagonal (N, N) blocks with static unrolled slices and pack them
    # side-by-side along lanes -> lane-dense (N, B*N) store instead of 8-lane masked
    # stores of a (B, N, N) layout. Sigmoid is applied only to the kept blocks.
    diag = jnp.concatenate(
        [logits[b * N:(b + 1) * N, b * N:(b + 1) * N] for b in range(B)], axis=1)
    out_ref[...] = jax.nn.sigmoid(diag)                  # (N, B*N)


def vgae_forward(x, adj, w1, w2, w3, noise, *, matmul_dtype=jnp.float32):
    B, N, D = x.shape
    H1 = w1.shape[1]
    H2 = w2.shape[1]
    assert adj.shape == (B, N, N)
    assert w1.shape == (D, H1)
    assert w2.shape == (H1, H2) and w3.shape == (H1, H2)
    assert noise.shape == (B, H2)
    # torch broadcasting of (B, H2) noise against (B, N, H2) only works when B == N
    # (or one of them is 1); we reproduce that (accidental) semantics exactly.
    assert B == N, "faithful to the torch module only when batch == num_nodes"

    # ---- wrapper-side layout plumbing (tiny, one-off XLA ops, no compute hoisted) --
    x_flat = x.reshape(B * N, D)                                   # (BN, D)
    w23 = jnp.concatenate([w2, w3], axis=1)                        # (H1, 2*H2)
    noise_flat = jnp.tile(noise, (B, 1))                           # row b*N+n -> noise[n]
    # Block-diagonal adjacency so every in-kernel matmul is a single 2D MXU GEMM.
    adj_bd = (jnp.eye(B, dtype=adj.dtype)[:, None, :, None]
              * adj[:, :, None, :]).reshape(B * N, B * N)          # (BN, BN)

    # Single pallas_call, no grid: per-grid-step fixed cost (~0.35us) would dominate
    # this kernel, so we deliberately do NOT split over batch / TensorCores.
    # TODO(synk): if N is scaled up, add a grid axis tiling adjacency rows (mark it
    # CORE_PARALLEL on v7x) and set vmem_limit_bytes -- v7x has only 64 MiB VMEM.
    out = pl.pallas_call(
        partial(_vgae_kernel, mm_dtype=matmul_dtype),
        out_shape=jax.ShapeDtypeStruct((N, B * N), jnp.float32),
        in_specs=[pl.BlockSpec(memory_space=pltpu.MemorySpace.VMEM)] * 5,
        out_specs=pl.BlockSpec(memory_space=pltpu.MemorySpace.VMEM),
    )(x_flat, adj_bd, w1, w23, noise_flat)

    # out[i, b*N + j] == A_pred[b, i, j]; un-plumb the lane-dense layout.
    return out.reshape(N, B, N).transpose(1, 0, 2)


def glorot_init(key, in_dim, out_dim):
    r = math.sqrt(6.0 / (in_dim + out_dim))
    return jax.random.uniform(key, (in_dim, out_dim), jnp.float32, -r, r)


if __name__ == "__main__":
    key = jax.random.PRNGKey(0)
    B = 8    # batch size (== num nodes; required by the torch noise broadcast)
    N = 8    # nodes per graph
    D = 16   # input_dim
    H1 = 32  # hidden1_dim
    H2 = 16  # hidden2_dim

    kx, kadj, k1, k2, k3, kn = jax.random.split(key, 6)
    x = jax.random.normal(kx, (B, N, D), jnp.float32)
    a = jax.random.uniform(kadj, (B, N, N), jnp.float32)
    adj = (a + jnp.transpose(a, (0, 2, 1))) * 0.5   # dense symmetric "adjacency"

    w1 = glorot_init(k1, D, H1)
    w2 = glorot_init(k2, H1, H2)
    w3 = glorot_init(k3, H1, H2)
    noise = jax.random.normal(kn, (B, H2), jnp.float32)  # torch.randn(X.size(0), hidden2_dim)

    a_pred = vgae_forward(x, adj, w1, w2, w3, noise)
    jax.block_until_ready(a_pred)

    # Pure-JAX f32 reference with identical semantics (including the torch noise broadcast).
    support1 = jnp.einsum("bnd,dh->bnh", x, w1)
    hidden = jax.nn.relu(jnp.einsum("bnm,bmh->bnh", adj, support1))
    mean = jnp.einsum("bnm,bmh->bnh", adj, jnp.einsum("bnh,hk->bnk", hidden, w2))
    logstd = jnp.einsum("bnm,bmh->bnh", adj, jnp.einsum("bnh,hk->bnk", hidden, w3))
    z = noise[None, :, :] * jnp.exp(logstd) + mean  # (B,H2) -> (1,B,H2) broadcast, B == N
    ref = jax.nn.sigmoid(jnp.einsum("bnk,bmk->bnm", z, z))
    assert a_pred.shape == ref.shape
    assert jnp.allclose(a_pred, ref, atol=1e-5, rtol=1e-5), "mismatch vs reference"

    print("KERNEL_OK")
</pallas_src>

<mosaic_0001>
module attributes {stable_mosaic.version = 11 : i64} {
  func.func @_vgae_kernel(%arg0: memref<64x16xf32, #tpu.memory_space<vmem>>, %arg1: memref<64x64xf32, #tpu.memory_space<vmem>>, %arg2: memref<16x32xf32, #tpu.memory_space<vmem>>, %arg3: memref<32x32xf32, #tpu.memory_space<vmem>>, %arg4: memref<64x16xf32, #tpu.memory_space<vmem>>, %arg5: memref<8x64xf32, #tpu.memory_space<vmem>>) attributes {dimension_semantics = [], scalar_prefetch = 0 : i64, scratch_operands = 0 : i64, tpu.core_type = #tpu.core_type<tc>} {
    %c0 = arith.constant 0 : index
    %c0_0 = arith.constant 0 : index
    %0 = vector.load %arg1[%c0, %c0_0] : memref<64x64xf32, #tpu.memory_space<vmem>>, vector<64x64xf32>
    %c0_1 = arith.constant 0 : index
    %c0_2 = arith.constant 0 : index
    %1 = vector.load %arg0[%c0_1, %c0_2] : memref<64x16xf32, #tpu.memory_space<vmem>>, vector<64x16xf32>
    %c0_3 = arith.constant 0 : index
    %c0_4 = arith.constant 0 : index
    %2 = vector.load %arg2[%c0_3, %c0_4] : memref<16x32xf32, #tpu.memory_space<vmem>>, vector<16x32xf32>
    %cst = arith.constant dense<0.000000e+00> : vector<64x32xf32>
    %3 = tpu.matmul %1, %2, %cst {dimension_numbers = #tpu.dot_dimension_numbers<[1], [0], [0], [1], [0, 0, 1, 1], [], []>} : vector<64x16xf32>, vector<16x32xf32>, vector<64x32xf32> -> vector<64x32xf32>
    %cst_5 = arith.constant dense<0.000000e+00> : vector<64x32xf32>
    %4 = tpu.matmul %0, %3, %cst_5 {dimension_numbers = #tpu.dot_dimension_numbers<[1], [0], [0], [1], [0, 0, 1, 1], [], []>} : vector<64x64xf32>, vector<64x32xf32>, vector<64x32xf32> -> vector<64x32xf32>
    %cst_6 = arith.constant 0.000000e+00 : f32
    %5 = vector.broadcast %cst_6 : f32 to vector<64x32xf32>
    %6 = arith.maximumf %4, %5 : vector<64x32xf32>
    %c0_7 = arith.constant 0 : index
    %c0_8 = arith.constant 0 : index
    %7 = vector.load %arg3[%c0_7, %c0_8] : memref<32x32xf32, #tpu.memory_space<vmem>>, vector<32x32xf32>
    %cst_9 = arith.constant dense<0.000000e+00> : vector<64x32xf32>
    %8 = tpu.matmul %6, %7, %cst_9 {dimension_numbers = #tpu.dot_dimension_numbers<[1], [0], [0], [1], [0, 0, 1, 1], [], []>} : vector<64x32xf32>, vector<32x32xf32>, vector<64x32xf32> -> vector<64x32xf32>
    %cst_10 = arith.constant dense<0.000000e+00> : vector<64x32xf32>
    %9 = tpu.matmul %0, %8, %cst_10 {dimension_numbers = #tpu.dot_dimension_numbers<[1], [0], [0], [1], [0, 0, 1, 1], [], []>} : vector<64x64xf32>, vector<64x32xf32>, vector<64x32xf32> -> vector<64x32xf32>
    %10 = vector.extract_strided_slice %9 {offsets = [0, 0], sizes = [64, 16], strides = [1, 1]} : vector<64x32xf32> to vector<64x16xf32>
    %11 = vector.extract_strided_slice %9 {offsets = [0, 16], sizes = [64, 16], strides = [1, 1]} : vector<64x32xf32> to vector<64x16xf32>
    %c0_11 = arith.constant 0 : index
    %c0_12 = arith.constant 0 : index
    %12 = vector.load %arg4[%c0_11, %c0_12] : memref<64x16xf32, #tpu.memory_space<vmem>>, vector<64x16xf32>
    %13 = math.exp %11 : vector<64x16xf32>
    %14 = arith.mulf %12, %13 : vector<64x16xf32>
    %15 = arith.addf %14, %10 : vector<64x16xf32>
    %cst_13 = arith.constant dense<0.000000e+00> : vector<64x64xf32>
    %16 = tpu.matmul %15, %15, %cst_13 {dimension_numbers = #tpu.dot_dimension_numbers<[1], [1], [0], [0], [0, 0, 1, 0], [], []>} : vector<64x16xf32>, vector<64x16xf32>, vector<64x64xf32> -> vector<64x64xf32>
    %17 = vector.extract_strided_slice %16 {offsets = [0, 0], sizes = [8, 8], strides = [1, 1]} : vector<64x64xf32> to vector<8x8xf32>
    %18 = vector.extract_strided_slice %16 {offsets = [8, 8], sizes = [8, 8], strides = [1, 1]} : vector<64x64xf32> to vector<8x8xf32>
    %19 = vector.extract_strided_slice %16 {offsets = [16, 16], sizes = [8, 8], strides = [1, 1]} : vector<64x64xf32> to vector<8x8xf32>
    %20 = vector.extract_strided_slice %16 {offsets = [24, 24], sizes = [8, 8], strides = [1, 1]} : vector<64x64xf32> to vector<8x8xf32>
    %21 = vector.extract_strided_slice %16 {offsets = [32, 32], sizes = [8, 8], strides = [1, 1]} : vector<64x64xf32> to vector<8x8xf32>
    %22 = vector.extract_strided_slice %16 {offsets = [40, 40], sizes = [8, 8], strides = [1, 1]} : vector<64x64xf32> to vector<8x8xf32>
    %23 = vector.extract_strided_slice %16 {offsets = [48, 48], sizes = [8, 8], strides = [1, 1]} : vector<64x64xf32> to vector<8x8xf32>
    %24 = vector.extract_strided_slice %16 {offsets = [56, 56], sizes = [8, 8], strides = [1, 1]} : vector<64x64xf32> to vector<8x8xf32>
    %25 = tpu.concatenate %17, %18, %19, %20, %21, %22, %23, %24 in 1 : vector<8x8xf32>, vector<8x8xf32>, vector<8x8xf32>, vector<8x8xf32>, vector<8x8xf32>, vector<8x8xf32>, vector<8x8xf32>, vector<8x8xf32> -> vector<8x64xf32>
    %26 = arith.negf %25 : vector<8x64xf32>
    %27 = math.exp %26 : vector<8x64xf32>
    %cst_14 = arith.constant 1.000000e+00 : f32
    %28 = vector.broadcast %cst_14 : f32 to vector<8x64xf32>
    %29 = arith.addf %28, %27 : vector<8x64xf32>
    %30 = arith.divf %28, %29 : vector<8x64xf32>
    %c0_15 = arith.constant 0 : index
    %c0_16 = arith.constant 0 : index
    %31 = vector.load %arg5[%c0_15, %c0_16] : memref<8x64xf32, #tpu.memory_space<vmem>>, vector<8x64xf32>
    tpu.vector_store %arg5[%c0_15, %c0_16], %30 {strides = array<i32>} : memref<8x64xf32, #tpu.memory_space<vmem>>, vector<8x64xf32>,
    return
  }
}

</mosaic_0001>

<bundles_post_ra>
// kernel: tpu_custom_call.1
= control target key start
LH: loop header
LB: loop body
LE: loop exit
PB: predicated region body
PF: predicated region fallthrough
CT: control target
= control target key end

     0   :  { %vm39_vm0 = vcmask 130048   ;;  %s1291_s0 = inlined_call_operand.vmem [shape: f32[64,16], index: 0, kind: input, shape index: {}]   ;;  %s1292_s1 = inlined_call_operand.vmem [shape: f32[64,64], index: 1, kind: input, shape index: {}]   ;;  %s1293_s2 = inlined_call_operand.vmem [shape: f32[16,32], index: 2, kind: input, shape index: {}]   ;;  %s1294_s3 = inlined_call_operand.vmem [shape: f32[32,32], index: 3, kind: input, shape index: {}]   ;;  %s1295_s4 = inlined_call_operand.vmem [shape: f32[64,16], index: 4, kind: input, shape index: {}]   ;;  %s1296_s5 = inlined_call_operand.hbm [shape: f32[8,64], index: 5, kind: output, shape index: {}]  }
   0x1   :  { %v38_v0 = vld [vmem:[%s1293_s2 + $0x8] sm:$0xff]  ;;  %v37_v1 = vld [vmem:[%s1293_s2] sm:$0xff]  ;;  %v31_v4 = vld [vmem:[%s1291_s0 + $0x10] sm:$0xff] }
   0x2   :  { %v29_v2 = vld [vmem:[%s1291_s0] sm:$0xff]  ;;  %899 = vmatprep.subr.mxu1 %v38_v0  ;;  %v30_v3 = vld [vmem:[%s1291_s0 + $0x8] sm:$0xff] }
   0x3   :  { %903 = vmatprep.mubr.msk.f32.mxu1 %vm39_vm0, %v29_v2  ;;  %900 = vmatpush3.msra.mxu1 %v38_v0 }
   0x4   :  { %901 = vmatprep.subr.mxu1 %v37_v1 }
   0x5   :  { %10 = vsyncpa [#allocation3], 0  ;;  %902 = vmatpush3.msra.mxu1 %v37_v1  ;;  %v32_v5 = vld [vmem:[%s1291_s0 + $0x18] sm:$0xff]  ;;  %v33_v6 = vld [vmem:[%s1291_s0 + $0x20] sm:$0xff]  ;;  %vm169_vm1 = vcmask 523264   ;;  %vm311_vm2 = vcmask 261120  }
   0x6   :  { %904 = vmatmul.mubr.msk.f32.vlgmr.msra.gmra.mxu1 %vm39_vm0, %v30_v3  ;;  %v34_v7 = vld [vmem:[%s1291_s0 + $0x28] sm:$0xff]  ;;  %v35_v8 = vld [vmem:[%s1291_s0 + $0x30] sm:$0xff]  ;;  %v36_v9 = vld [vmem:[%s1291_s0 + $0x38] sm:$0xff]  ;;  %vm747_vm3 = vcmask 64512   ;;  %vm750_vm4 = vcmask 195584   ;;  %vm753_vm5 = vcmask 326656  }
   0x7   :  { %906 = vmatprep.mubr.msk.f32.mxu1 %vm39_vm0, %v31_v4  ;;  %v21_v10 = vld [vmem:[%s1292_s1] sm:$0xff]  ;;  %v310_v11 = vld [vmem:[%s1294_s3 + $0x18] sm:$0xff]  ;;  %v1143_v20 = vld [vmem:[%s1292_s1 + $0x8] sm:$0xff]  ;;  %vm755_vm6 = vcmask 392192   ;;  %vm757_vm7 = vcmask 457728  }
   0x8   :  { %943 = vmatprep.subr.mxu0 %v310_v11  ;;  %v1148_v21 = vld [vmem:[%s1292_s1 + $0x10] sm:$0xff]  ;;  %v1157_v22 = vld [vmem:[%s1292_s1 + $0x18] sm:$0xff]  ;;  %v1162_v23 = vld [vmem:[%s1292_s1 + $0x20] sm:$0xff] }
   0x9   :  { %944 = vmatpush3.msra.mxu0 %v310_v11  ;;  %v1171_v24 = vld [vmem:[%s1292_s1 + $0x28] sm:$0xff]  ;;  %v1176_v25 = vld [vmem:[%s1292_s1 + $0x30] sm:$0xff]  ;;  %v1185_v26 = vld [vmem:[%s1292_s1 + $0x38] sm:$0xff] }
   0xa   :  { %907 = vmatmul.mubr.msk.f32.gmra.mxu1 %vm39_vm0, %v32_v5  ;;  %v309_v27 = vld [vmem:[%s1294_s3 + $0x10] sm:$0xff]  ;;  %v308_v28 = vld [vmem:[%s1294_s3 + $0x8] sm:$0xff]  ;;  %v307_v29 = vld [vmem:[%s1294_s3] sm:$0xff]  ;;  %s1063_s3 = smov 112  }
   0xb   :  { %909 = vmatprep.mubr.msk.f32.mxu1 %vm39_vm0, %v33_v6  ;;  %945 = vmatprep.subr.mxu0 %v309_v27 }
   0xc   :  { %946 = vmatpush3.msra.mxu0 %v309_v27  ;;  %v546_v27 = vld [vmem:[%s1295_s4] sm:$0xff] }
   0xd   :  { %947 = vmatprep.subr.mxu0 %v308_v28 }
   0xe   :  { %910 = vmatmul.mubr.msk.f32.gmra.mxu1 %vm39_vm0, %v34_v7  ;;  %948 = vmatpush3.msra.mxu0 %v308_v28 }
   0xf   :  { %912 = vmatprep.mubr.msk.f32.mxu1 %vm39_vm0, %v35_v8  ;;  %949 = vmatprep.subr.mxu0 %v307_v29 }
  0x10   :  { %950 = vmatpush3.msra.mxu0 %v307_v29 }
  0x12   :  { %913 = vmatmul.mubr.msk.f32.gmra.mxu1 %vm39_vm0, %v36_v9 }
  0x13   :  { %931 = vmatprep.mubr.msk.f32.mxu1 %vm169_vm1, %v21_v10 }
  0xc6   :  { %v905_v12 = vpop.f32.mrf.mxu1 }
  0xc8   :  { %v130_v13 = vpop.f32.mrf.mxu1 }
  0xca   :  { %v908_v14 = vpop.f32.mrf.mxu1 }
  0xcc   :  { %v140_v15 = vpop.f32.mrf.mxu1 }
  0xce   :  { %v911_v16 = vpop.f32.mrf.mxu1 }
  0xd0   :  { %v150_v17 = vpop.f32.mrf.mxu1 }
  0xd2   :  { %v914_v18 = vpop.f32.mrf.mxu1 }
  0xd3   :  { %915 = vmatprep.subr.mxu1 %v914_v18 }
  0xd4   :  { %v160_v19 = vpop.f32.mrf.mxu1  ;;  %916 = vmatpush3.msra.mxu1 %v914_v18 }
  0xd5   :  { %917 = vmatprep.subr.mxu1 %v160_v19 }
  0xd6   :  { %918 = vmatpush3.msra.mxu1 %v160_v19  ;;  %v551_v19 = vld [vmem:[%s1295_s4 + $0x28] sm:$0xff] }
  0xd7   :  { %919 = vmatprep.subr.mxu1 %v911_v16 }
  0xd8   :  { %920 = vmatpush3.msra.mxu1 %v911_v16 }
  0xd9   :  { %921 = vmatprep.subr.mxu1 %v150_v17 }
  0xda   :  { %922 = vmatpush3.msra.mxu1 %v150_v17 }
  0xdb   :  { %923 = vmatprep.subr.mxu1 %v908_v14 }
  0xdc   :  { %924 = vmatpush3.msra.mxu1 %v908_v14 }
  0xdd   :  { %925 = vmatprep.subr.mxu1 %v140_v15 }
  0xde   :  { %926 = vmatpush3.msra.mxu1 %v140_v15  ;;  %v553_v15 = vld [vmem:[%s1295_s4 + $0x38] sm:$0xff] }
  0xdf   :  { %927 = vmatprep.subr.mxu1 %v905_v12 }
  0xe0   :  { %928 = vmatpush3.msra.mxu1 %v905_v12 }
  0xe1   :  { %929 = vmatprep.subr.mxu1 %v130_v13 }
  0xe2   :  { %930 = vmatpush3.msra.mxu1 %v130_v13 }
  0xe3   :  { %932 = vmatmul.mubr.msk.f32.vlgmr.msra.gmra.mxu1 %vm169_vm1, %v1143_v20 }
  0xe4   :  { %934 = vmatprep.mubr.msk.f32.mxu1 %vm169_vm1, %v1148_v21 }
  0xe7   :  { %935 = vmatmul.mubr.msk.f32.gmra.mxu1 %vm169_vm1, %v1157_v22 }
  0xe8   :  { %937 = vmatprep.mubr.msk.f32.mxu1 %vm169_vm1, %v1162_v23 }
  0xeb   :  { %938 = vmatmul.mubr.msk.f32.gmra.mxu1 %vm169_vm1, %v1171_v24 }
  0xec   :  { %940 = vmatprep.mubr.msk.f32.mxu1 %vm169_vm1, %v1176_v25 }
  0xef   :  { %941 = vmatmul.mubr.msk.f32.gmra.mxu1 %vm169_vm1, %v1185_v26 }
  0xf0   :  { %979 = vmatprep.mubr.msk.f32.mxu1 %vm169_vm1, %v21_v10 }
 0x1a3   :  { %v933_v30 = vpop.f32.mrf.mxu1 }
 0x1a4   :  { %v300_v33 = vmax.f32 %v933_v30, 0.0 }
 0x1a5   :  { %v260_v31 = vpop.f32.mrf.mxu1 }
 0x1a6   :  { %v299_v32 = vmax.f32 %v260_v31, 0.0 }
 0x1a7   :  { %v936_v34 = vpop.f32.mrf.mxu1 }
 0x1a8   :  { %951 = vmatprep.mubr.msk.f32.mxu0 %vm311_vm2, %v299_v32  ;;  %v302_v37 = vmax.f32 %v936_v34, 0.0 }
 0x1a9   :  { %v270_v35 = vpop.f32.mrf.mxu1  ;;  %952 = vmatmul.mubr.msk.f32.vlgmr.msra.gmra.mxu0 %vm311_vm2, %v300_v33  ;;  %v549_v33 = vld [vmem:[%s1295_s4 + $0x18] sm:$0xff] }
 0x1aa   :  { %v301_v36 = vmax.f32 %v270_v35, 0.0 }
 0x1ab   :  { %v939_v38 = vpop.f32.mrf.mxu1 }
 0x1ac   :  { %954 = vmatprep.mubr.msk.f32.mxu0 %vm311_vm2, %v301_v36  ;;  %v304_v41 = vmax.f32 %v939_v38, 0.0  ;;  %v548_v38 = vld [vmem:[%s1295_s4 + $0x10] sm:$0xff] }
 0x1ad   :  { %v280_v39 = vpop.f32.mrf.mxu1  ;;  %955 = vmatmul.mubr.msk.f32.gmra.mxu0 %vm311_vm2, %v302_v37 }
 0x1ae   :  { %v303_v40 = vmax.f32 %v280_v39, 0.0 }
 0x1af   :  { %v942_v42 = vpop.f32.mrf.mxu1 }
 0x1b0   :  { %957 = vmatprep.mubr.msk.f32.mxu0 %vm311_vm2, %v303_v40  ;;  %v306_v45 = vmax.f32 %v942_v42, 0.0 }
 0x1b1   :  { %v290_v43 = vpop.f32.mrf.mxu1  ;;  %958 = vmatmul.mubr.msk.f32.gmra.mxu0 %vm311_vm2, %v304_v41  ;;  %v547_v41 = vld [vmem:[%s1295_s4 + $0x8] sm:$0xff] }
 0x1b2   :  { %v305_v44 = vmax.f32 %v290_v43, 0.0 }
 0x1b4   :  { %960 = vmatprep.mubr.msk.f32.mxu0 %vm311_vm2, %v305_v44 }
 0x1b5   :  { %961 = vmatmul.mubr.msk.f32.gmra.mxu0 %vm311_vm2, %v306_v45 }
 0x269   :  { %v953_v46 = vpop.f32.mrf.mxu0 }
 0x26b   :  { %v402_v47 = vpop.f32.mrf.mxu0 }
 0x26d   :  { %v956_v48 = vpop.f32.mrf.mxu0 }
 0x26f   :  { %v412_v49 = vpop.f32.mrf.mxu0 }
 0x271   :  { %v959_v50 = vpop.f32.mrf.mxu0 }
 0x273   :  { %v422_v51 = vpop.f32.mrf.mxu0 }
 0x275   :  { %v962_v52 = vpop.f32.mrf.mxu0 }
 0x276   :  { %963 = vmatprep.subr.mxu1 %v962_v52 }
 0x277   :  { %v432_v53 = vpop.f32.mrf.mxu0  ;;  %964 = vmatpush3.msra.mxu1 %v962_v52 }
 0x278   :  { %965 = vmatprep.subr.mxu1 %v432_v53 }
 0x279   :  { %966 = vmatpush3.msra.mxu1 %v432_v53 }
 0x27a   :  { %967 = vmatprep.subr.mxu1 %v959_v50 }
 0x27b   :  { %968 = vmatpush3.msra.mxu1 %v959_v50 }
 0x27c   :  { %969 = vmatprep.subr.mxu1 %v422_v51 }
 0x27d   :  { %970 = vmatpush3.msra.mxu1 %v422_v51 }
 0x27e   :  { %971 = vmatprep.subr.mxu1 %v956_v48 }
 0x27f   :  { %972 = vmatpush3.msra.mxu1 %v956_v48 }
 0x280   :  { %973 = vmatprep.subr.mxu1 %v412_v49 }
 0x281   :  { %974 = vmatpush3.msra.mxu1 %v412_v49 }
 0x282   :  { %975 = vmatprep.subr.mxu1 %v953_v46 }
 0x283   :  { %976 = vmatpush3.msra.mxu1 %v953_v46 }
 0x284   :  { %977 = vmatprep.subr.mxu1 %v402_v47 }
 0x285   :  { %978 = vmatpush3.msra.mxu1 %v402_v47 }
 0x286   :  { %980 = vmatmul.mubr.msk.f32.vlgmr.msra.gmra.mxu1 %vm169_vm1, %v1143_v20  ;;  %v552_v20 = vld [vmem:[%s1295_s4 + $0x30] sm:$0xff] }
 0x287   :  { %982 = vmatprep.mubr.msk.f32.mxu1 %vm169_vm1, %v1148_v21 }
 0x28a   :  { %983 = vmatmul.mubr.msk.f32.gmra.mxu1 %vm169_vm1, %v1157_v22 }
 0x28b   :  { %985 = vmatprep.mubr.msk.f32.mxu1 %vm169_vm1, %v1162_v23 }
 0x28e   :  { %986 = vmatmul.mubr.msk.f32.gmra.mxu1 %vm169_vm1, %v1171_v24 }
 0x28f   :  { %988 = vmatprep.mubr.msk.f32.mxu1 %vm169_vm1, %v1176_v25 }
 0x292   :  { %989 = vmatmul.mubr.msk.f32.gmra.mxu1 %vm169_vm1, %v1185_v26  ;;  %v550_v26 = vld [vmem:[%s1295_s4 + $0x20] sm:$0xff]  ;;  %s1064_s4 = smov [#allocation2]  }
 0x293   :  { %s772_s23 = sshll.u32 %s1064_s4, 4  ;;  %s773_s23 = int_to_ptr.vmem [resolvable:$true] %s772_s23 }
 0x294   :  { %s1041_s24 = scalar_lea.vmem %s773_s23, 128  ;;  %p1046_p1 = scmp.lt.s32.totalorder %s773_s23, %s773_s23 }
 0x295   :  { %p1042_p0 = scmp.ne.s32.totalorder %s773_s23, %s1041_s24  ;;  %p1047_p2 = scmp.lt.s32.totalorder %s1041_s24, %s1041_s24 }
 0x297   :  { %p1048_p3 = por %p1047_p2, %p1046_p1 }
 0x299   :  { %p1049_p4 = pnand %p1048_p3, %p1042_p0 }
 0x346   :  { %v1221_v54 = vpop.f32.mrf.mxu1 }
 0x347   :  { %v556_v5 = vmul.f32 1.442695, %v1221_v54 }
 0x348   :  { %v1223_v55 = vpop.f32.mrf.mxu1 }
 0x349   :  { %v554_v3 = vmul.f32 1.442695, %v1223_v55 }
 0x34a   :  { %v1225_v56 = vpop.f32.mrf.mxu1 }
 0x34b   :  { %v560_v4 = vmul.f32 1.442695, %v1225_v56 }
 0x34c   :  { %v1227_v57 = vpop.f32.mrf.mxu1 }
 0x34d   :  { %v558_v0 = vmul.f32 1.442695, %v1227_v57 }
 0x34e   :  { %v987_v58 = vpop.f32.mrf.mxu1 }
 0x34f   :  { %v564_v59 = vmul.f32 1.442695, %v987_v58 }
 0x350   :  { %v527_v60 = vpop.f32.mrf.mxu1 }
 0x351   :  { %1021 = vpow2.f32 %v564_v59  ;;  %v562_v61 = vmul.f32 1.442695, %v527_v60 }
 0x352   :  { %v990_v62 = vpop.f32.mrf.mxu1 }
 0x353   :  { %v568_v63 = vmul.f32 1.442695, %v990_v62  ;;  %1023 = vpow2.f32 %v562_v61 }
 0x354   :  { %v537_v1 = vpop.f32.mrf.mxu1 }
 0x355   :  { %1025 = vpow2.f32 %v568_v63  ;;  %v566_v2 = vmul.f32 1.442695, %v537_v1 }
 0x356   :  { %1027 = vpow2.f32 %v558_v0 }
 0x357   :  { %1029 = vpow2.f32 %v566_v2 }
 0x358   :  { %1031 = vpow2.f32 %v554_v3 }
 0x359   :  { %1033 = vpow2.f32 %v560_v4 }
 0x35a   :  { %1035 = vpow2.f32 %v556_v5 }
 0x35e   :  { %v1022_v6 = vpop.eup %1021 }
 0x35f   :  { %588 = vrot.lane.b32.xlu1 %v1022_v6, %s1063_s3 }
 0x360   :  { %v1024_v7 = vpop.eup %1023 }
 0x362   :  { %v1026_v8 = vpop.eup %1025 }
 0x363   :  { %586 = vrot.lane.b32.xlu1 %v1024_v7, %s1063_s3  ;;  %592 = vrot.lane.b32.xlu0 %v1026_v8, %s1063_s3  ;;  %v1028_v9 = vpop.eup %1027 }
 0x364   :  { %v1030_v10 = vpop.eup %1029 }
 0x365   :  { %v1032_v11 = vpop.eup %1031 }
 0x366   :  { %v1034_v12 = vpop.eup %1033 }
 0x367   :  { %582 = vrot.lane.b32.xlu1 %v1028_v9, %s1063_s3  ;;  %590 = vrot.lane.b32.xlu0 %v1030_v10, %s1063_s3  ;;  %v1036_v13 = vpop.eup %1035 }
 0x36b   :  { %578 = vrot.lane.b32.xlu1 %v1032_v11, %s1063_s3  ;;  %584 = vrot.lane.b32.xlu0 %v1034_v12, %s1063_s3 }
 0x36f   :  { %580 = vrot.lane.b32.xlu0 %v1036_v13, %s1063_s3 }
 0x3d1   :  { %v589_v14 = vpop.permute.xlu1 %588 }
 0x3d2   :  { %v607_v24 = vmul.f32 %v589_v14, %v551_v19 }
 0x3d4   :  { %v615_v30 = vadd.f32 %v987_v58, %v607_v24 }
 0x3d5   :  { %v587_v16 = vpop.permute.xlu1 %586  ;;  %v593_v17 = vpop.permute.xlu0 %592 }
 0x3d6   :  { %v609_v18 = vmul.f32 %v593_v17, %v553_v15  ;;  %v606_v31 = vmul.f32 %v587_v16, %v550_v26 }
 0x3d8   :  { %v617_v21 = vadd.f32 %v990_v62, %v609_v18  ;;  %v614_v36 = vadd.f32 %v606_v31, %v527_v60 }
 0x3d9   :  { %v583_v22 = vpop.permute.xlu1 %582  ;;  %v591_v23 = vpop.permute.xlu0 %590 }
 0x3da   :  { %v608_v25 = vmul.f32 %v591_v23, %v552_v20  ;;  %991 = vmatprep.subr.msk.mxu0 %vm39_vm0, %v617_v21  ;;  %v604_v39 = vmul.f32 %v583_v22, %v548_v38 }
 0x3db   :  { %992 = vmatpush3.xpose.msk.msra.mxu0 %vm39_vm0, %v617_v21 }
 0x3dc   :  { %v616_v28 = vadd.f32 %v608_v25, %v537_v1  ;;  %v612_v43 = vadd.f32 %v604_v39, %v1227_v57 }
 0x3dd   :  { %v579_v29 = vpop.permute.xlu1 %578  ;;  %v585_v34 = vpop.permute.xlu0 %584 }
 0x3de   :  { %v602_v32 = vmul.f32 %v579_v29, %v546_v27  ;;  %993 = vmatprep.subr.msk.mxu0 %vm39_vm0, %v616_v28  ;;  %v605_v37 = vmul.f32 %v585_v34, %v549_v33 }
 0x3df   :  { %994 = vmatpush3.xpose.msk.msra.mxu0 %vm39_vm0, %v616_v28 }
 0x3e0   :  { %v610_v35 = vadd.f32 %v602_v32, %v1223_v55  ;;  %995 = vmatprep.subr.msk.mxu0 %vm39_vm0, %v615_v30  ;;  %v613_v40 = vadd.f32 %v1225_v56, %v605_v37 }
 0x3e1   :  { %v581_v42 = vpop.permute.xlu0 %580 }
 0x3e2   :  { %1007 = vmatprep.mubr.msk.f32.mxu0 %vm39_vm0, %v610_v35  ;;  %v603_v44 = vmul.f32 %v581_v42, %v547_v41 }
 0x3e3   :  { %996 = vmatpush3.xpose.msk.msra.mxu0 %vm39_vm0, %v615_v30 }
 0x3e4   :  { %997 = vmatprep.subr.msk.mxu0 %vm39_vm0, %v614_v36  ;;  %v611_v45 = vadd.f32 %v1221_v54, %v603_v44 }
 0x3e7   :  { %998 = vmatpush3.xpose.msk.msra.mxu0 %vm39_vm0, %v614_v36 }
 0x3e8   :  { %999 = vmatprep.subr.msk.mxu0 %vm39_vm0, %v613_v40 }
 0x3eb   :  { %1000 = vmatpush3.xpose.msk.msra.mxu0 %vm39_vm0, %v613_v40 }
 0x3ec   :  { %1001 = vmatprep.subr.msk.mxu0 %vm39_vm0, %v612_v43 }
 0x3ef   :  { %1002 = vmatpush3.xpose.msk.msra.mxu0 %vm39_vm0, %v612_v43 }
 0x3f0   :  { %1003 = vmatprep.subr.msk.mxu0 %vm39_vm0, %v611_v45 }
 0x3f3   :  { %1004 = vmatpush3.xpose.msk.msra.mxu0 %vm39_vm0, %v611_v45 }
 0x3f4   :  { %1005 = vmatprep.subr.msk.mxu0 %vm39_vm0, %v610_v35 }
 0x3f7   :  { %1006 = vmatpush3.xpose.msk.msra.mxu0 %vm39_vm0, %v610_v35 }
 0x3fa   :  { %1008 = vmatmul.mubr.msk.f32.vlgmr.msra.gmra.mxu0 %vm39_vm0, %v611_v45 }
 0x3fb   :  { %1010 = vmatprep.mubr.msk.f32.mxu0 %vm39_vm0, %v612_v43 }
 0x3fe   :  { %1011 = vmatmul.mubr.msk.f32.gmra.mxu0 %vm39_vm0, %v613_v40 }
 0x3ff   :  { %1013 = vmatprep.mubr.msk.f32.mxu0 %vm39_vm0, %v614_v36 }
 0x402   :  { %1014 = vmatmul.mubr.msk.f32.gmra.mxu0 %vm39_vm0, %v615_v30 }
 0x403   :  { %1016 = vmatprep.mubr.msk.f32.mxu0 %vm39_vm0, %v616_v28 }
 0x406   :  { %1017 = vmatmul.mubr.msk.f32.gmra.mxu0 %vm39_vm0, %v617_v21 }
 0x4ba   :  { %v1009_v46 = vpop.f32.mrf.mxu0 }
 0x4bc   :  { %v708_v47 = vpop.f32.mrf.mxu0 }
 0x4bd   :  { %v748_v49 = vsel %vm747_vm3, %v708_v47, %v1009_v46 }
 0x4be   :  { %v1012_v48 = vpop.f32.mrf.mxu0 }
 0x4c0   :  { %v718_v50 = vpop.f32.mrf.mxu0 }
 0x4c1   :  { %v749_v51 = vsel %vm39_vm0, %v748_v49, %v718_v50 }
 0x4c2   :  { %v1015_v52 = vpop.f32.mrf.mxu0  ;;  %v751_v54 = vsel %vm750_vm4, %v749_v51, %v1012_v48 }
 0x4c4   :  { %v728_v53 = vpop.f32.mrf.mxu0 }
 0x4c5   :  { %v752_v55 = vsel %vm311_vm2, %v751_v54, %v728_v53 }
 0x4c6   :  { %v1018_v56 = vpop.f32.mrf.mxu0  ;;  %v754_v58 = vsel %vm753_vm5, %v752_v55, %v1015_v52 }
 0x4c8   :  { %v738_v57 = vpop.f32.mrf.mxu0 }
 0x4c9   :  { %v756_v59 = vsel %vm755_vm6, %v754_v58, %v738_v57 }
 0x4ca   :  { %v758_v60 = vsel %vm757_vm7, %v756_v59, %v1018_v56 }
 0x4cb   :  { %v828_v61 = vmul.f32 -1.442695, %v758_v60 }
 0x4cd   :  { %1037 = vpow2.f32 %v828_v61 }
 0x4da   :  { %v1038_v62 = vpop.eup %1037 }
 0x4db   :  { %v762_v63 = vadd.f32 1.0, %v1038_v62 }
 0x4dd   :  { %1039 = vrcp.f32 %v762_v63 }
 0x4ea   :  { %v1040_v0 = vpop.eup %1039 }
 0x4eb   :  { %765 = vst.msk [vmem:[#allocation2] sm:$0xff] %vm169_vm1, %v1040_v0 }
 0x4ec   :  { %1052 = shalt.err (!%p1049_p4)
}
 0x4ed   :  { %775 = dma.vmem_to_hbm [thread:$0]  %s773_s23, 128, %s1296_s5, [#allocation3]  }
 0x4ee   :  { %1061 = dma.done.wait [#allocation3], 128  }
 0x4ef   :  { %1062 = vsyncadd [#allocation3], 4294967168 }
 0x4f0   :  { %779 = vsyncpa [#allocation3], 1 }

</bundles_post_ra>
